<compile_context>
chip_gen: v7x
topology: tpu7x:2x2x1
jax: 0.10.0
libtpu: 0.0.40
codegen_flags: <defaults>
</compile_context>

<pallas_src>
import functools

import jax
import jax.numpy as jnp
from jax import lax
from jax.experimental import pallas as pl
from jax.experimental.pallas import tpu as pltpu

LANES = 128
SUBLANES = 8
ALIGN_ELEMS = 2 * SUBLANES * LANES   # 2048: keeps rows a multiple of 16 (bf16-safe)
MAX_TILE_ROWS = 4096                 # (4096,128) f32 = 2 MiB per input per block
TARGET_STRIP_ROWS = 256              # in-kernel strip size (caps live temporaries)

# Deterministic "module parameters" (FocalTverskyLoss.__init__ args).
ALPHA = 0.7
BETA = 0.3
GAMMA = 0.75


def _round_up(v, m):
    return ((v + m - 1) // m) * m


def _pick_strip_rows(tile_rows, target):
    """Largest multiple of 8 that divides tile_rows and is <= target."""
    best = SUBLANES
    s = SUBLANES
    while s <= min(target, tile_rows):
        if tile_rows % s == 0:
            best = s
        s += SUBLANES
    return best


def _num_tensorcores():
    """Best-effort TensorCores per chip: v4/v5p/v7x have 2, v5e/v6e have 1."""
    try:
        kind = jax.devices()[0].device_kind.lower()
    except Exception:  # pragma: no cover - never fail the kernel on detection
        return 1
    if any(tag in kind for tag in ("v7", "7x", "v5p", "v4")):
        return 2
    return 1


def _focal_tversky_kernel(x_ref, t_ref, o_ref, tp_acc, s_acc, t_acc, *,
                          n, tile_rows, strip_rows, steps_per_core,
                          any_partial):
    c = pl.program_id(0)   # TensorCore-split axis ("parallel")
    i = pl.program_id(1)   # streaming reduction axis ("arbitrary")

    @pl.when(i == 0)
    def _init():
        tp_acc[...] = jnp.zeros_like(tp_acc)
        s_acc[...] = jnp.zeros_like(s_acc)
        t_acc[...] = jnp.zeros_like(t_acc)

    block_elems = tile_rows * LANES
    base = (c * steps_per_core + i) * block_elems   # flat element offset of block
    num_strips = tile_rows // strip_rows
    g = strip_rows // SUBLANES

    def run(masked):
        if masked:
            # Flat in-strip element index; hoisted out of the strip loop.
            strip_idx = (
                lax.broadcasted_iota(jnp.int32, (strip_rows, LANES), 0) * LANES
                + lax.broadcasted_iota(jnp.int32, (strip_rows, LANES), 1))

        def strip_body(s, carry):
            tp_run, s_run, t_run = carry
            r0 = s * strip_rows
            x = x_ref[pl.ds(r0, strip_rows), :].astype(jnp.float32)
            tgt = t_ref[pl.ds(r0, strip_rows), :].astype(jnp.float32)
            # sigmoid via a single EUP op: sigmoid(x) = 0.5 * (1 + tanh(x/2))
            sig = 0.5 * (1.0 + jnp.tanh(0.5 * x))
            if masked:
                remain = n - base - r0 * LANES   # <= 0 for phantom blocks
                mask = strip_idx < remain
                # Mask BEFORE the product so OOB garbage/NaN never reaches sums.
                sig = jnp.where(mask, sig, 0.0)
                tgt = jnp.where(mask, tgt, 0.0)
            sig3 = sig.reshape(g, SUBLANES, LANES)
            tgt3 = tgt.reshape(g, SUBLANES, LANES)
            return (tp_run + jnp.sum(sig3 * tgt3, axis=0),
                    s_run + jnp.sum(sig3, axis=0),
                    t_run + jnp.sum(tgt3, axis=0))

        zero = jnp.zeros((SUBLANES, LANES), jnp.float32)
        if num_strips == 1:
            tp_run, s_run, t_run = strip_body(0, (zero, zero, zero))
        else:
            unroll = num_strips if num_strips <= 4 else 4
            tp_run, s_run, t_run = lax.fori_loop(
                0, num_strips, strip_body, (zero, zero, zero), unroll=unroll)
        # Running sums were carried in vregs; touch scratch once per grid step.
        tp_acc[...] += tp_run
        s_acc[...] += s_run
        t_acc[...] += t_run

    if any_partial:
        full = (base + block_elems) <= n   # whole block holds valid elements

        @pl.when(full)
        def _fast_path():
            run(False)

        @pl.when(jnp.logical_not(full))
        def _masked_tail():
            run(True)
    else:
        # Statically provable: every block is completely valid -> no mask code.
        run(False)

    @pl.when(i == pl.num_programs(1) - 1)
    def _emit():
        # Per-core partial sums packed as 3 stacked (8,128) slabs.
        o_ref[0, 0:SUBLANES, :] = tp_acc[...]
        o_ref[0, SUBLANES:2 * SUBLANES, :] = s_acc[...]
        o_ref[0, 2 * SUBLANES:3 * SUBLANES, :] = t_acc[...]


def focal_tversky_loss(inputs, targets, alpha=ALPHA, beta=BETA, gamma=GAMMA,
                       epsilon=1e-3):
    """Matches FocalTverskyLoss(alpha, beta, gamma).forward(inputs, targets)."""
    x = jnp.ravel(inputs)
    t = jnp.ravel(targets)
    if not jnp.issubdtype(t.dtype, jnp.floating):
        t = t.astype(jnp.float32)   # bool/int targets -> float for clean tiling
    n = int(x.shape[0])

    # Reshape to (rows, 128); copy (zero-pad) only when n is not 2048-aligned.
    # Padded / out-of-bounds elements are neutralized in-kernel via masking.
    n_pad = _round_up(n, ALIGN_ELEMS)
    if n_pad != n:
        x = jnp.pad(x, (0, n_pad - n))
        t = jnp.pad(t, (0, n_pad - n))
    rows = n_pad // LANES
    x2 = x.reshape(rows, LANES)
    t2 = t.reshape(rows, LANES)

    tile_rows = MAX_TILE_ROWS if rows >= MAX_TILE_ROWS else rows
    strip_rows = _pick_strip_rows(tile_rows, TARGET_STRIP_ROWS)
    num_blocks = pl.cdiv(rows, tile_rows)

    # Chip-aware core split: only 2-TC chips, and only when both cores get
    # meaningful work (phantom-block waste <= 1/8 of the stream).
    ncores = _num_tensorcores()
    if num_blocks < 8:
        ncores = 1
    steps = pl.cdiv(num_blocks, ncores)

    any_partial = (n != n_pad) or (rows % tile_rows != 0) \
        or (ncores * steps != num_blocks)

    kernel = functools.partial(
        _focal_tversky_kernel, n=n, tile_rows=int(tile_rows),
        strip_rows=int(strip_rows), steps_per_core=int(steps),
        any_partial=bool(any_partial))

    def in_map(c, i):
        # Clamp phantom blocks (uneven core split) onto the last real block;
        # their contribution is masked to zero in-kernel.
        return (jnp.minimum(c * steps + i, num_blocks - 1), 0)

    out_rows = 3 * SUBLANES
    tile_in_bytes = int(tile_rows) * LANES * (x2.dtype.itemsize + t2.dtype.itemsize)
    # 2 inputs x double buffer + strip-sized temporaries/accumulator slack;
    # capped well under v7x's 64 MiB physical VMEM per TensorCore.
    vmem_limit = int(min(48 << 20, 2 * tile_in_bytes + (16 << 20)))

    in_bytes = x2.size * x2.dtype.itemsize + t2.size * t2.dtype.itemsize
    cost = pl.CostEstimate(
        flops=8 * n,
        transcendentals=n,
        bytes_accessed=int(in_bytes + ncores * out_rows * LANES * 4))

    # TODO(synk): on v7x, verify with xprof that the "parallel" c-axis actually
    # shards across both TensorCores; if not, switch to pltpu.CORE_PARALLEL /
    # pl.core_map, and sweep pipeline_mode=pl.Buffered(3) on the input specs.
    parts = pl.pallas_call(
        kernel,
        out_shape=jax.ShapeDtypeStruct((ncores, out_rows, LANES), jnp.float32),
        grid_spec=pltpu.PrefetchScalarGridSpec(
            num_scalar_prefetch=0,
            grid=(ncores, steps),
            in_specs=[
                pl.BlockSpec((tile_rows, LANES), in_map),
                pl.BlockSpec((tile_rows, LANES), in_map),
            ],
            out_specs=pl.BlockSpec((1, out_rows, LANES), lambda c, i: (c, 0, 0)),
            scratch_shapes=[
                pltpu.VMEM((SUBLANES, LANES), jnp.float32),  # sum(s*t) partials
                pltpu.VMEM((SUBLANES, LANES), jnp.float32),  # sum(s)   partials
                pltpu.VMEM((SUBLANES, LANES), jnp.float32),  # sum(t)   partials
            ],
        ),
        compiler_params=pltpu.CompilerParams(
            dimension_semantics=("parallel", "arbitrary"),
            vmem_limit_bytes=vmem_limit),
        cost_estimate=cost,
    )(x2, t2)

    # Tiny finalize on (ncores, 24, 128) partials: combine cores + Tversky/pow.
    tp = jnp.sum(parts[:, 0:SUBLANES, :])
    s_sum = jnp.sum(parts[:, SUBLANES:2 * SUBLANES, :])
    t_sum = jnp.sum(parts[:, 2 * SUBLANES:3 * SUBLANES, :])
    fp = s_sum - tp   # sum((1 - t) * s)
    fn = t_sum - tp   # sum(t * (1 - s))
    tversky = (tp + epsilon) / (tp + alpha * fp + beta * fn + epsilon)
    # Deliberate (benign) divergence from PyTorch: clamp f32 rounding negatives
    # so the fractional power never sees a tiny negative base (PyTorch -> NaN).
    one_minus = jnp.maximum(1.0 - tversky, 0.0)
    return one_minus ** gamma


def _reference(inputs, targets, alpha=ALPHA, beta=BETA, gamma=GAMMA,
               epsilon=1e-3):
    x = jax.nn.sigmoid(jnp.ravel(inputs).astype(jnp.float32))
    t = jnp.ravel(targets).astype(jnp.float32)
    tp = jnp.sum(x * t)
    fp = jnp.sum((1.0 - t) * x)
    fn = jnp.sum(t * (1.0 - x))
    tversky = (tp + epsilon) / (tp + alpha * fp + beta * fn + epsilon)
    return (1.0 - tversky) ** gamma


if __name__ == "__main__":
    key = jax.random.PRNGKey(0)

    def run_check(shape, k):
        k1, k2 = jax.random.split(k)
        inputs = jax.random.normal(k1, shape, dtype=jnp.float32)
        targets = (jax.random.uniform(k2, shape) > 0.5).astype(jnp.float32)
        loss = focal_tversky_loss(inputs, targets)
        jax.block_until_ready(loss)
        ref = _reference(inputs, targets)
        assert jnp.allclose(loss, ref, rtol=1e-4, atol=1e-5), (shape, loss, ref)
        return loss

    k0, k1, k2 = jax.random.split(key, 3)
    run_check((2, 4, 16, 16), k0)      # aligned, single block, static fast path
    run_check((2, 3, 7, 11), k1)       # misaligned -> in-kernel tail masking
    run_check((2, 4, 512, 160), k2)    # multi-block stream, partial last block
    print("KERNEL_OK")
</pallas_src>

<mosaic_0001>
module attributes {stable_mosaic.version = 11 : i64} {
  func.func @_focal_tversky_kernel(%arg0: i32, %arg1: i32, %arg2: memref<16x128xf32, #tpu.memory_space<vmem>>, %arg3: memref<16x128xf32, #tpu.memory_space<vmem>>, %arg4: memref<1x24x128xf32, #tpu.memory_space<vmem>>, %arg5: memref<8x128xf32, #tpu.memory_space<vmem>>, %arg6: memref<8x128xf32, #tpu.memory_space<vmem>>, %arg7: memref<8x128xf32, #tpu.memory_space<vmem>>) attributes {dimension_semantics = [#tpu.dimension_semantics<parallel>, #tpu.dimension_semantics<arbitrary>], iteration_bounds = array<i64: 1, 1>, scalar_prefetch = 0 : i64, scratch_operands = 3 : i64, tpu.core_type = #tpu.core_type<tc>, window_params = [{transform_indices = @transform_0, window_bounds = array<i64: 16, 128>}, {transform_indices = @transform_1, window_bounds = array<i64: 16, 128>}, {transform_indices = @transform_2, window_bounds = array<i64: 1, 24, 128>}]} {
    %c0_i32 = arith.constant 0 : i32
    %0 = arith.cmpi eq, %arg1, %c0_i32 : i32
    %1 = arith.extui %0 : i1 to i32
    %c0_i32_0 = arith.constant 0 : i32
    %2 = arith.cmpi ne, %1, %c0_i32_0 : i32
    scf.if %2 {
      %cst_24 = arith.constant 0.000000e+00 : f32
      %34 = vector.broadcast %cst_24 : f32 to vector<8x128xf32>
      %c0_25 = arith.constant 0 : index
      %c0_26 = arith.constant 0 : index
      %35 = vector.load %arg5[%c0_25, %c0_26] : memref<8x128xf32, #tpu.memory_space<vmem>>, vector<8x128xf32>
      tpu.vector_store %arg5[%c0_25, %c0_26], %34 {strides = array<i32>} : memref<8x128xf32, #tpu.memory_space<vmem>>, vector<8x128xf32>,
      %cst_27 = arith.constant 0.000000e+00 : f32
      %36 = vector.broadcast %cst_27 : f32 to vector<8x128xf32>
      %c0_28 = arith.constant 0 : index
      %c0_29 = arith.constant 0 : index
      %37 = vector.load %arg6[%c0_28, %c0_29] : memref<8x128xf32, #tpu.memory_space<vmem>>, vector<8x128xf32>
      tpu.vector_store %arg6[%c0_28, %c0_29], %36 {strides = array<i32>} : memref<8x128xf32, #tpu.memory_space<vmem>>, vector<8x128xf32>,
      %cst_30 = arith.constant 0.000000e+00 : f32
      %38 = vector.broadcast %cst_30 : f32 to vector<8x128xf32>
      %c0_31 = arith.constant 0 : index
      %c0_32 = arith.constant 0 : index
      %39 = vector.load %arg7[%c0_31, %c0_32] : memref<8x128xf32, #tpu.memory_space<vmem>>, vector<8x128xf32>
      tpu.vector_store %arg7[%c0_31, %c0_32], %38 {strides = array<i32>} : memref<8x128xf32, #tpu.memory_space<vmem>>, vector<8x128xf32>,
    } else {
    }
    %cst = arith.constant 0.000000e+00 : f32
    %3 = vector.broadcast %cst : f32 to vector<8x128xf32>
    %c0 = arith.constant 0 : index
    %c0_1 = arith.constant 0 : index
    %4 = vector.load %arg2[%c0, %c0_1] : memref<16x128xf32, #tpu.memory_space<vmem>>, vector<16x128xf32>
    %c0_2 = arith.constant 0 : index
    %c0_3 = arith.constant 0 : index
    %5 = vector.load %arg3[%c0_2, %c0_3] : memref<16x128xf32, #tpu.memory_space<vmem>>, vector<16x128xf32>
    %cst_4 = arith.constant 5.000000e-01 : f32
    %6 = vector.broadcast %cst_4 : f32 to vector<16x128xf32>
    %7 = arith.mulf %6, %4 : vector<16x128xf32>
    %8 = math.tanh %7 : vector<16x128xf32>
    %cst_5 = arith.constant 1.000000e+00 : f32
    %9 = vector.broadcast %cst_5 : f32 to vector<16x128xf32>
    %10 = arith.addf %9, %8 : vector<16x128xf32>
    %cst_6 = arith.constant 5.000000e-01 : f32
    %11 = vector.broadcast %cst_6 : f32 to vector<16x128xf32>
    %12 = arith.mulf %11, %10 : vector<16x128xf32>
    %13 = vector.shape_cast %12 : vector<16x128xf32> to vector<2x8x128xf32>
    %14 = vector.shape_cast %5 : vector<16x128xf32> to vector<2x8x128xf32>
    %15 = arith.mulf %13, %14 : vector<2x8x128xf32>
    %cst_7 = arith.constant dense<0.000000e+00> : vector<8x128xf32>
    %16 = vector.multi_reduction <add>, %15, %cst_7 [0] : vector<2x8x128xf32> to vector<8x128xf32>
    %17 = arith.addf %3, %16 : vector<8x128xf32>
    %cst_8 = arith.constant dense<0.000000e+00> : vector<8x128xf32>
    %18 = vector.multi_reduction <add>, %13, %cst_8 [0] : vector<2x8x128xf32> to vector<8x128xf32>
    %19 = arith.addf %3, %18 : vector<8x128xf32>
    %cst_9 = arith.constant dense<0.000000e+00> : vector<8x128xf32>
    %20 = vector.multi_reduction <add>, %14, %cst_9 [0] : vector<2x8x128xf32> to vector<8x128xf32>
    %21 = arith.addf %3, %20 : vector<8x128xf32>
    %c0_10 = arith.constant 0 : index
    %c0_11 = arith.constant 0 : index
    %22 = vector.load %arg5[%c0_10, %c0_11] : memref<8x128xf32, #tpu.memory_space<vmem>>, vector<8x128xf32>
    %23 = arith.addf %22, %17 : vector<8x128xf32>
    %c0_12 = arith.constant 0 : index
    %c0_13 = arith.constant 0 : index
    %24 = vector.load %arg5[%c0_12, %c0_13] : memref<8x128xf32, #tpu.memory_space<vmem>>, vector<8x128xf32>
    tpu.vector_store %arg5[%c0_12, %c0_13], %23 {strides = array<i32>} : memref<8x128xf32, #tpu.memory_space<vmem>>, vector<8x128xf32>,
    %c0_14 = arith.constant 0 : index
    %c0_15 = arith.constant 0 : index
    %25 = vector.load %arg6[%c0_14, %c0_15] : memref<8x128xf32, #tpu.memory_space<vmem>>, vector<8x128xf32>
    %26 = arith.addf %25, %19 : vector<8x128xf32>
    %c0_16 = arith.constant 0 : index
    %c0_17 = arith.constant 0 : index
    %27 = vector.load %arg6[%c0_16, %c0_17] : memref<8x128xf32, #tpu.memory_space<vmem>>, vector<8x128xf32>
    tpu.vector_store %arg6[%c0_16, %c0_17], %26 {strides = array<i32>} : memref<8x128xf32, #tpu.memory_space<vmem>>, vector<8x128xf32>,
    %c0_18 = arith.constant 0 : index
    %c0_19 = arith.constant 0 : index
    %28 = vector.load %arg7[%c0_18, %c0_19] : memref<8x128xf32, #tpu.memory_space<vmem>>, vector<8x128xf32>
    %29 = arith.addf %28, %21 : vector<8x128xf32>
    %c0_20 = arith.constant 0 : index
    %c0_21 = arith.constant 0 : index
    %30 = vector.load %arg7[%c0_20, %c0_21] : memref<8x128xf32, #tpu.memory_space<vmem>>, vector<8x128xf32>
    tpu.vector_store %arg7[%c0_20, %c0_21], %29 {strides = array<i32>} : memref<8x128xf32, #tpu.memory_space<vmem>>, vector<8x128xf32>,
    %c0_i32_22 = arith.constant 0 : i32
    %31 = arith.cmpi eq, %arg1, %c0_i32_22 : i32
    %32 = arith.extui %31 : i1 to i32
    %c0_i32_23 = arith.constant 0 : i32
    %33 = arith.cmpi ne, %32, %c0_i32_23 : i32
    scf.if %33 {
      %c0_24 = arith.constant 0 : index
      %c0_25 = arith.constant 0 : index
      %34 = vector.load %arg5[%c0_24, %c0_25] : memref<8x128xf32, #tpu.memory_space<vmem>>, vector<8x128xf32>
      %c0_26 = arith.constant 0 : index
      %c0_27 = arith.constant 0 : index
      %c0_28 = arith.constant 0 : index
      %35 = vector.load %arg4[%c0_26, %c0_27, %c0_28] : memref<1x24x128xf32, #tpu.memory_space<vmem>>, vector<1x8x128xf32>
      %36 = vector.shape_cast %35 : vector<1x8x128xf32> to vector<8x128xf32>
      %37 = vector.shape_cast %34 : vector<8x128xf32> to vector<1x8x128xf32>
      tpu.vector_store %arg4[%c0_26, %c0_27, %c0_28], %37 {strides = array<i32>} : memref<1x24x128xf32, #tpu.memory_space<vmem>>, vector<1x8x128xf32>,
      %c0_29 = arith.constant 0 : index
      %c0_30 = arith.constant 0 : index
      %38 = vector.load %arg6[%c0_29, %c0_30] : memref<8x128xf32, #tpu.memory_space<vmem>>, vector<8x128xf32>
      %c0_31 = arith.constant 0 : index
      %c8 = arith.constant 8 : index
      %c0_32 = arith.constant 0 : index
      %39 = vector.load %arg4[%c0_31, %c8, %c0_32] : memref<1x24x128xf32, #tpu.memory_space<vmem>>, vector<1x8x128xf32>
      %40 = vector.shape_cast %39 : vector<1x8x128xf32> to vector<8x128xf32>
      %41 = vector.shape_cast %38 : vector<8x128xf32> to vector<1x8x128xf32>
      tpu.vector_store %arg4[%c0_31, %c8, %c0_32], %41 {strides = array<i32>} : memref<1x24x128xf32, #tpu.memory_space<vmem>>, vector<1x8x128xf32>,
      %c0_33 = arith.constant 0 : index
      %c0_34 = arith.constant 0 : index
      %42 = vector.load %arg7[%c0_33, %c0_34] : memref<8x128xf32, #tpu.memory_space<vmem>>, vector<8x128xf32>
      %c0_35 = arith.constant 0 : index
      %c16 = arith.constant 16 : index
      %c0_36 = arith.constant 0 : index
      %43 = vector.load %arg4[%c0_35, %c16, %c0_36] : memref<1x24x128xf32, #tpu.memory_space<vmem>>, vector<1x8x128xf32>
      %44 = vector.shape_cast %43 : vector<1x8x128xf32> to vector<8x128xf32>
      %45 = vector.shape_cast %42 : vector<8x128xf32> to vector<1x8x128xf32>
      tpu.vector_store %arg4[%c0_35, %c16, %c0_36], %45 {strides = array<i32>} : memref<1x24x128xf32, #tpu.memory_space<vmem>>, vector<1x8x128xf32>,
    } else {
    }
    return
  }
  func.func @transform_0(%arg0: i32, %arg1: i32) -> (i32, i32) {
    %c1_i32 = arith.constant 1 : i32
    %0 = arith.muli %arg0, %c1_i32 : i32
    %1 = arith.addi %0, %arg1 : i32
    %c0_i32 = arith.constant 0 : i32
    %2 = arith.minsi %1, %c0_i32 : i32
    %c0_i32_0 = arith.constant 0 : i32
    %c0_i32_1 = arith.constant 0 : i32
    return %2, %c0_i32_0 : i32, i32
  }
  func.func @transform_1(%arg0: i32, %arg1: i32) -> (i32, i32) {
    %c1_i32 = arith.constant 1 : i32
    %0 = arith.muli %arg0, %c1_i32 : i32
    %1 = arith.addi %0, %arg1 : i32
    %c0_i32 = arith.constant 0 : i32
    %2 = arith.minsi %1, %c0_i32 : i32
    %c0_i32_0 = arith.constant 0 : i32
    %c0_i32_1 = arith.constant 0 : i32
    return %2, %c0_i32_0 : i32, i32
  }
  func.func @transform_2(%arg0: i32, %arg1: i32) -> (i32, i32, i32) {
    %c0_i32 = arith.constant 0 : i32
    %c0_i32_0 = arith.constant 0 : i32
    %c0_i32_1 = arith.constant 0 : i32
    return %arg0, %c0_i32, %c0_i32_0 : i32, i32, i32
  }
}

</mosaic_0001>

<bundles_post_ra>
// kernel: tpu_custom_call.1
= control target key start
LH: loop header
LB: loop body
LE: loop exit
PB: predicated region body
PF: predicated region fallthrough
CT: control target
= control target key end

     0   :  { %7 = vsyncpa [#allocation6], 0  ;;  %s273_s0 = inlined_call_operand.hbm [shape: f32[16,128], index: 0, kind: input, shape index: {}]   ;;  %s274_s1 = inlined_call_operand.hbm [shape: f32[16,128], index: 1, kind: input, shape index: {}]   ;;  %s275_s2 = inlined_call_operand.hbm [shape: f32[1,24,128], index: 2, kind: output, shape index: {}]  }
   0x1   :  { %8 = vsyncpa [#allocation9], 0 }
   0x2   :  { %9 = vsyncpa [#allocation7], 0  ;;  %s208_s9 = smov [#allocation5]   ;;  %s136_s13 = scalar_lea.hbm %s273_s0, 256 }
   0x3   :  { %s21_s10 = sshll.u32 %s208_s9, 4  ;;  %p137_p0 = scmp.ne.s32.totalorder %s273_s0, %s136_s13  ;;  %s22_s10 = int_to_ptr.vmem [resolvable:$true] %s21_s10 }
   0x4   :  { %p140_p1 = scmp.lt.u32.totalorder %s136_s13, %s273_s0 }
   0x6   :  { %p142_p2 = pnand %p140_p1, %p137_p0 }
   0x8   :  { %145 = shalt.err (!%p142_p2)
}
   0x9   :  { %s146_s18 = scalar_lea.vmem %s22_s10, 256  ;;  %p151_p4 = scmp.lt.s32.totalorder %s22_s10, %s22_s10 }
   0xa   :  { %p147_p3 = scmp.ne.s32.totalorder %s22_s10, %s146_s18  ;;  %p152_p5 = scmp.lt.s32.totalorder %s146_s18, %s146_s18 }
   0xc   :  { %p153_p6 = por %p152_p5, %p151_p4 }
   0xe   :  { %p154_p7 = pnand %p153_p6, %p147_p3 }
  0x10   :  { %157 = shalt.err (!%p154_p7)
}
  0x11   :  { %s209_s19 = smov 128   ;;  %s210_s20 = smov 8  }
  0x12   :  { %27 = dma.hbm_to_vmem [thread:$0]  %s273_s0, 256, %s22_s10, [#allocation6], %s209_s19, %s209_s19, %s210_s20  }
  0x13   :  { %s211_s23 = smov [#allocation8]   ;;  %s158_s27 = scalar_lea.hbm %s274_s1, 256 }
  0x14   :  { %s39_s24 = sshll.u32 %s211_s23, 4  ;;  %p159_p8 = scmp.ne.s32.totalorder %s274_s1, %s158_s27  ;;  %s40_s24 = int_to_ptr.vmem [resolvable:$true] %s39_s24 }
  0x15   :  { %p162_p9 = scmp.lt.u32.totalorder %s158_s27, %s274_s1 }
  0x17   :  { %p164_p10 = pnand %p162_p9, %p159_p8 }
  0x19   :  { %167 = shalt.err (!%p164_p10)
}
  0x1a   :  { %s168_s4 = scalar_lea.vmem %s40_s24, 256  ;;  %p173_p12 = scmp.lt.s32.totalorder %s40_s24, %s40_s24 }
  0x1b   :  { %p169_p11 = scmp.ne.s32.totalorder %s40_s24, %s168_s4  ;;  %p174_p13 = scmp.lt.s32.totalorder %s168_s4, %s168_s4 }
  0x1d   :  { %p175_p0 = por %p174_p13, %p173_p12 }
  0x1f   :  { %p176_p1 = pnand %p175_p0, %p169_p11 }
  0x21   :  { %179 = shalt.err (!%p176_p1)
}
  0x22   :  { %45 = dma.hbm_to_vmem [thread:$0]  %s274_s1, 256, %s40_s24, [#allocation9], %s209_s19, %s209_s19, %s210_s20  }
  0x23   :  { %202 = dma.done.wait [#allocation6], 256  }
  0x24   :  { %203 = vsyncadd [#allocation6], 4294967040 }
  0x25   :  { %204 = dma.done.wait [#allocation9], 256  }
  0x26   :  { %205 = vsyncadd [#allocation9], 4294967040  ;;  %v67_v0 = vld [vmem:[#allocation5] sm:$0xff]  ;;  %v68_v1 = vld [vmem:[#allocation5 + $0x8] sm:$0xff]  ;;  %s212_s1 = smov [#allocation10]  }
  0x27   :  { %v69_v2 = vld [vmem:[#allocation8] sm:$0xff]  ;;  %v70_v3 = vld [vmem:[#allocation8 + $0x8] sm:$0xff]  ;;  %v71_v4 = vmul.f32 0.5, %v67_v0  ;;  %v72_v5 = vmul.f32 0.5, %v68_v1  ;;  %s110_s6 = sshll.u32 %s212_s1, 4  ;;  %s111_s6 = int_to_ptr.vmem [resolvable:$true] %s110_s6 }
  0x28   :  { %v85_v6 = vadd.f32 %v70_v3, %v69_v2  ;;  %s180_s7 = scalar_lea.vmem %s111_s6, 384  ;;  %p185_p3 = scmp.lt.s32.totalorder %s111_s6, %s111_s6 }
  0x29   :  { %132 = vtanh.f32 %v71_v4  ;;  %p181_p2 = scmp.ne.s32.totalorder %s111_s6, %s180_s7  ;;  %p186_p4 = scmp.lt.s32.totalorder %s180_s7, %s180_s7 }
  0x2a   :  { %134 = vtanh.f32 %v72_v5  ;;  %104 = vst [vmem:[#allocation10 + $0x10] sm:$0xff] %v85_v6 }
  0x2b   :  { %p187_p5 = por %p186_p4, %p185_p3 }
  0x2d   :  { %p188_p6 = pnand %p187_p5, %p181_p2 }
  0x33   :  { %v133_v7 = vpop.eup %132 }
  0x34   :  { %v135_v8 = vpop.eup %134  ;;  %v75_v9 = vadd.f32 1.0, %v133_v7 }
  0x35   :  { %v76_v10 = vadd.f32 1.0, %v135_v8 }
  0x36   :  { %v77_v11 = vmul.f32 0.5, %v75_v9 }
  0x37   :  { %v78_v12 = vmul.f32 0.5, %v76_v10 }
  0x38   :  { %v79_v13 = vmul.f32 %v77_v11, %v69_v2 }
  0x39   :  { %v80_v14 = vmul.f32 %v78_v12, %v70_v3  ;;  %v83_v15 = vadd.f32 %v78_v12, %v77_v11 }
  0x3b   :  { %v81_v16 = vadd.f32 %v80_v14, %v79_v13  ;;  %102 = vst [vmem:[#allocation10 + $0x8] sm:$0xff] %v83_v15 }
  0x3d   :  { %100 = vst [vmem:[#allocation10] sm:$0xff] %v81_v16 }
  0x3e   :  { %191 = shalt.err (!%p188_p6)
}
  0x3f   :  { %s192_s10 = scalar_lea.hbm %s275_s2, 384 }
  0x40   :  { %p193_p7 = scmp.ne.s32.totalorder %s275_s2, %s192_s10  ;;  %p196_p8 = scmp.lt.u32.totalorder %s192_s10, %s275_s2 }
  0x42   :  { %p198_p9 = pnand %p196_p8, %p193_p7 }
  0x44   :  { %201 = shalt.err (!%p198_p9)
}
  0x45   :  { %116 = dma.vmem_to_hbm [thread:$0]  %s111_s6, 384, %s275_s2, [#allocation7], %s209_s19, %s209_s19, %s210_s20  }
  0x46   :  { %206 = dma.done.wait [#allocation7], 384  }
  0x47   :  { %207 = vsyncadd [#allocation7], 4294966912 }
  0x48   :  { %120 = vsyncpa [#allocation6], 1 }
  0x49   :  { %121 = vsyncpa [#allocation9], 1 }
  0x4a   :  { %122 = vsyncpa [#allocation7], 1 }

</bundles_post_ra>
